<compile_context>
chip_gen: v5e
topology: v5e:2x2
jax: 0.10.0
libtpu: 0.0.40
codegen_flags: <defaults>
</compile_context>

<pallas_src>
import numpy as np
import jax
import jax.numpy as jnp
from jax.experimental import pallas as pl
from jax.experimental.pallas import tpu as pltpu


def build_upsample_weights(w_oihw, bias, W, r):
    """Fold 3x3 conv weights + PixelShuffle permutation + W zero-padding into
    banded matrices M[dh] : (W*C, r*W*r*C) (bf16) and a shuffled bias row
    b_wide : (1, r*W*r*C) (f32).  Hoisted: done once per model, in numpy.

    Column layout (sub-row index i outermost):
        col = i*(W*r*C) + (w*r + j)*C + c      with k = c*r*r + i*r + j
    so a (TH, r*W*r*C) matmul result, viewed as (TH, r, W, r, C), is exactly
    the pixel-shuffled NHWC output rows h*r + i  ->  no post-kernel transpose.
    """
    w = np.asarray(w_oihw, dtype=np.float32)   # (C*r*r, C, 3, 3)
    b = np.asarray(bias, dtype=np.float32)     # (C*r*r,)
    COUT, C, KH, KW = w.shape
    assert (KH, KW) == (3, 3) and COUT == C * r * r

    WRC = W * r * C
    NCOLS = r * WRC
    M = np.zeros((3, W * C, NCOLS), np.float32)
    b_wide = np.zeros((1, NCOLS), np.float32)
    for i in range(r):
        for j in range(r):
            for c in range(C):
                k = c * r * r + i * r + j
                for wp in range(W):
                    col = i * WRC + (wp * r + j) * C + c
                    b_wide[0, col] = b[k]
                    for dh in range(3):
                        for dw in range(3):
                            wi = wp + dw - 1
                            if 0 <= wi < W:       # W boundary -> zero pad
                                M[dh, wi * C:(wi + 1) * C, col] = w[k, :, dh, dw]
    # bf16 weights: 2x MXU throughput, half the VMEM/HBM bytes; accumulation
    # stays f32 inside the kernel (preferred_element_type).
    return jnp.asarray(M, dtype=jnp.bfloat16), jnp.asarray(b_wide, dtype=jnp.float32)


def _make_kernel(TH, WC, NCOLS):
    def kernel(x_ref, m_ref, b_ref, o_ref, xp_ref):
        # x_ref : (1, H, WC)       full NHWC-wide image for this batch element
        # m_ref : (3, WC, NCOLS)   bf16 banded conv+shuffle weights (resident)
        # b_ref : (1, NCOLS)       f32 shuffled bias row (resident)
        # o_ref : (1, TH, NCOLS)   pre-interleaved NHWC output strip (dense)
        # xp_ref: (TH+2, WC)       bf16 halo-padded input strip scratch
        h = pl.program_id(1)
        nh = pl.num_programs(1)
        h0 = pl.multiple_of(h * TH, TH)

        # Strip body rows (cast to bf16 for the MXU).
        xp_ref[1:TH + 1, :] = x_ref[0, pl.ds(h0, TH), :].astype(xp_ref.dtype)

        # Top halo: zero only on the first strip, else previous image row.
        @pl.when(h == 0)
        def _():
            xp_ref[0:1, :] = jnp.zeros((1, WC), xp_ref.dtype)

        @pl.when(h > 0)
        def _():
            xp_ref[0:1, :] = x_ref[0, pl.ds(h0 - 1, 1), :].astype(xp_ref.dtype)

        # Bottom halo: zero only on the last strip, else next image row.
        @pl.when(h == nh - 1)
        def _():
            xp_ref[TH + 1:TH + 2, :] = jnp.zeros((1, WC), xp_ref.dtype)

        @pl.when(h < nh - 1)
        def _():
            xp_ref[TH + 1:TH + 2, :] = x_ref[0, pl.ds(h0 + TH, 1), :].astype(xp_ref.dtype)

        # 3 MXU matmuls (one per vertical tap), N = r*W*r*C columns, f32 acc.
        # Each shifted view is loaded (and realigned) exactly once per strip.
        x0 = xp_ref[0:TH, :]
        x1 = xp_ref[1:TH + 1, :]
        x2 = xp_ref[2:TH + 2, :]
        acc = jnp.dot(x0, m_ref[0], preferred_element_type=jnp.float32)
        acc = acc + jnp.dot(x1, m_ref[1], preferred_element_type=jnp.float32)
        acc = acc + jnp.dot(x2, m_ref[2], preferred_element_type=jnp.float32)
        acc = acc + b_ref[...]
        # Single dense, lane-wide store: rows are already pixel-shuffled.
        o_ref[0, :, :] = acc.astype(o_ref.dtype)

    return kernel


def _pick_tile_h(H, tile_h):
    if H <= tile_h:
        return H
    for th in range(tile_h, 7, -1):          # largest 8-aligned divisor of H
        if H % th == 0 and th % 8 == 0:
            return th
    return H


def upsample_block_forward_nhwc(x_nhwc, m_banded, b_wide, upscale_factor, tile_h=256):
    """NHWC -> NHWC forward (no HBM transpose passes around the kernel)."""
    N, H, W, C = x_nhwc.shape
    r = upscale_factor
    WC = W * C
    NCOLS = r * W * r * C
    TH = _pick_tile_h(H, tile_h)
    nh = H // TH

    x_wide = x_nhwc.reshape(N, H, WC)                       # free reshape

    # VMEM budget from the actual (double-buffered) footprint, capped for
    # v7x's 64 MiB/TC.  Weights/bias have constant index maps so their second
    # buffer is wasted but tiny at these sizes.
    vmem_bytes = (2 * H * WC * 4                # input image block
                  + 2 * 3 * WC * NCOLS * 2      # bf16 banded weights
                  + 2 * NCOLS * 4               # bias row
                  + 2 * TH * NCOLS * 4          # output strip
                  + (TH + 2) * WC * 2)          # xp scratch
    vmem_limit = int(min(max(2 * vmem_bytes, 8 << 20), 64 << 20))

    flops = 2 * 3 * N * H * WC * NCOLS
    bytes_accessed = (N * H * WC * 4 + N * H * NCOLS * 4
                      + 3 * WC * NCOLS * 2 + NCOLS * 4)

    out = pl.pallas_call(
        _make_kernel(TH, WC, NCOLS),
        out_shape=jax.ShapeDtypeStruct((N, H, NCOLS), jnp.float32),
        grid_spec=pltpu.PrefetchScalarGridSpec(
            num_scalar_prefetch=0,
            grid=(N, nh),
            in_specs=[
                # full image per batch element, resident across the h axis
                pl.BlockSpec((1, H, WC), lambda n, h: (n, 0, 0)),
                # banded weights + bias: resident across the whole grid
                pl.BlockSpec((3, WC, NCOLS), lambda n, h: (0, 0, 0)),
                pl.BlockSpec((1, NCOLS), lambda n, h: (0, 0)),
            ],
            out_specs=pl.BlockSpec((1, TH, NCOLS), lambda n, h: (n, h, 0)),
            scratch_shapes=[pltpu.VMEM((TH + 2, WC), jnp.bfloat16)],
        ),
        compiler_params=pltpu.CompilerParams(
            dimension_semantics=("parallel", "parallel"),
            vmem_limit_bytes=vmem_limit,
        ),
        cost_estimate=pl.CostEstimate(
            flops=flops, transcendentals=0, bytes_accessed=bytes_accessed),
    )(x_wide, m_banded, b_wide)

    # (N, H, r*W*r*C) -> (N, H*r, W*r, C): pure reshape, no transpose.
    return out.reshape(N, H * r, W * r, C)


def upsample_block_forward(x_nchw, m_banded, b_wide, upscale_factor, tile_h=256):
    """PyTorch-layout entry point: NCHW in, NCHW out.  The two layout
    conversions are boundary-only; prefer the NHWC entry point when the
    surrounding model is NHWC."""
    x_nhwc = jnp.transpose(x_nchw, (0, 2, 3, 1))
    y_nhwc = upsample_block_forward_nhwc(x_nhwc, m_banded, b_wide,
                                         upscale_factor, tile_h)
    return jnp.transpose(y_nhwc, (0, 3, 1, 2))


if __name__ == "__main__":
    key = jax.random.PRNGKey(0)
    N, C, H, W = 2, 4, 16, 16
    r = 2
    COUT = C * r * r

    k_x, k_w, k_b = jax.random.split(key, 3)
    x = jax.random.normal(k_x, (N, C, H, W), dtype=jnp.float32)
    # Deterministic parameter init (PyTorch-like uniform scale).
    fan_in = C * 3 * 3
    bound = 1.0 / (fan_in ** 0.5)
    w = jax.random.uniform(k_w, (COUT, C, 3, 3), jnp.float32, -bound, bound)
    b = jax.random.uniform(k_b, (COUT,), jnp.float32, -bound, bound)

    # Hoisted once-per-model weight relayout (not in the per-call hot path).
    m_banded, b_wide = build_upsample_weights(w, b, W, r)

    fwd = jax.jit(upsample_block_forward, static_argnums=(3, 4))
    out = fwd(x, m_banded, b_wide, r, 256)
    out = jax.block_until_ready(out)
    assert out.shape == (N, C, H * r, W * r), out.shape

    # Cross-check against XLA's reference conv + pixel shuffle (f32).
    ref_conv = jax.lax.conv_general_dilated(
        x, w, window_strides=(1, 1), padding=((1, 1), (1, 1)),
        dimension_numbers=("NCHW", "OIHW", "NCHW"),
    ) + b.reshape(1, COUT, 1, 1)
    ref = ref_conv.reshape(N, C, r, r, H, W).transpose(0, 1, 4, 2, 5, 3)
    ref = ref.reshape(N, C, H * r, W * r)
    # bf16 weights/activations with f32 accumulation -> relaxed tolerance.
    assert jnp.allclose(out, ref, atol=2e-2, rtol=2e-2), float(
        jnp.max(jnp.abs(out - ref)))

    print("KERNEL_OK")
</pallas_src>

<mosaic_0001>
module attributes {stable_mosaic.version = 11 : i64} {
  func.func @kernel(%arg0: i32, %arg1: i32, %arg2: memref<1x16x64xf32, #tpu.memory_space<vmem>>, %arg3: memref<3x64x256xbf16, #tpu.memory_space<vmem>>, %arg4: memref<1x256xf32, #tpu.memory_space<vmem>>, %arg5: memref<1x16x256xf32, #tpu.memory_space<vmem>>, %arg6: memref<18x64xbf16, #tpu.memory_space<vmem>>) attributes {dimension_semantics = [#tpu.dimension_semantics<parallel>, #tpu.dimension_semantics<parallel>], iteration_bounds = array<i64: 2, 1>, scalar_prefetch = 0 : i64, scratch_operands = 1 : i64, tpu.core_type = #tpu.core_type<tc>, window_params = [{transform_indices = @transform_0, window_bounds = array<i64: 1, 16, 64>}, {pipeline_mode = #tpu.pipeline_mode<synchronous>, transform_indices = @transform_1, window_bounds = array<i64: 3, 64, 256>}, {pipeline_mode = #tpu.pipeline_mode<synchronous>, transform_indices = @transform_2, window_bounds = array<i64: 1, 256>}, {transform_indices = @transform_3, window_bounds = array<i64: 1, 16, 256>}]} {
    %c16_i32 = arith.constant 16 : i32
    %0 = arith.muli %arg1, %c16_i32 : i32
    %1 = tpu.assume_multiple %0, 16 : i32
    %c0 = arith.constant 0 : index
    %2 = arith.index_cast %1 : i32 to index
    %c0_0 = arith.constant 0 : index
    %3 = vector.load %arg2[%c0, %2, %c0_0] : memref<1x16x64xf32, #tpu.memory_space<vmem>>, vector<1x16x64xf32>
    %4 = vector.shape_cast %3 : vector<1x16x64xf32> to vector<16x64xf32>
    %5 = arith.truncf %4 : vector<16x64xf32> to vector<16x64xbf16>
    %c1 = arith.constant 1 : index
    %c0_1 = arith.constant 0 : index
    %6 = vector.load %arg6[%c1, %c0_1] : memref<18x64xbf16, #tpu.memory_space<vmem>>, vector<16x64xbf16>
    tpu.vector_store %arg6[%c1, %c0_1], %5 {strides = array<i32>} : memref<18x64xbf16, #tpu.memory_space<vmem>>, vector<16x64xbf16>,
    %c0_i32 = arith.constant 0 : i32
    %7 = arith.cmpi eq, %arg1, %c0_i32 : i32
    %8 = arith.extui %7 : i1 to i32
    %c0_i32_2 = arith.constant 0 : i32
    %9 = arith.cmpi ne, %8, %c0_i32_2 : i32
    scf.if %9 {
      %cst_30 = arith.constant 0.000000e+00 : bf16
      %39 = vector.broadcast %cst_30 : bf16 to vector<1x64xbf16>
      %c0_31 = arith.constant 0 : index
      %c0_32 = arith.constant 0 : index
      %40 = vector.load %arg6[%c0_31, %c0_32] : memref<18x64xbf16, #tpu.memory_space<vmem>>, vector<1x64xbf16>
      tpu.vector_store %arg6[%c0_31, %c0_32], %39 {strides = array<i32>} : memref<18x64xbf16, #tpu.memory_space<vmem>>, vector<1x64xbf16>,
    } else {
    }
    %c0_i32_3 = arith.constant 0 : i32
    %10 = arith.cmpi sgt, %arg1, %c0_i32_3 : i32
    %11 = arith.extui %10 : i1 to i32
    %c0_i32_4 = arith.constant 0 : i32
    %12 = arith.cmpi ne, %11, %c0_i32_4 : i32
    scf.if %12 {
      %c1_i32 = arith.constant 1 : i32
      %39 = arith.subi %1, %c1_i32 : i32
      %c0_30 = arith.constant 0 : index
      %40 = arith.index_cast %39 : i32 to index
      %c0_31 = arith.constant 0 : index
      %41 = vector.load %arg2[%c0_30, %40, %c0_31] : memref<1x16x64xf32, #tpu.memory_space<vmem>>, vector<1x1x64xf32>
      %42 = vector.shape_cast %41 : vector<1x1x64xf32> to vector<1x64xf32>
      %43 = arith.truncf %42 : vector<1x64xf32> to vector<1x64xbf16>
      %c0_32 = arith.constant 0 : index
      %c0_33 = arith.constant 0 : index
      %44 = vector.load %arg6[%c0_32, %c0_33] : memref<18x64xbf16, #tpu.memory_space<vmem>>, vector<1x64xbf16>
      tpu.vector_store %arg6[%c0_32, %c0_33], %43 {strides = array<i32>} : memref<18x64xbf16, #tpu.memory_space<vmem>>, vector<1x64xbf16>,
    } else {
    }
    %c0_i32_5 = arith.constant 0 : i32
    %13 = arith.cmpi eq, %arg1, %c0_i32_5 : i32
    %14 = arith.extui %13 : i1 to i32
    %c0_i32_6 = arith.constant 0 : i32
    %15 = arith.cmpi ne, %14, %c0_i32_6 : i32
    scf.if %15 {
      %cst_30 = arith.constant 0.000000e+00 : bf16
      %39 = vector.broadcast %cst_30 : bf16 to vector<1x64xbf16>
      %c17 = arith.constant 17 : index
      %c0_31 = arith.constant 0 : index
      %40 = vector.load %arg6[%c17, %c0_31] : memref<18x64xbf16, #tpu.memory_space<vmem>>, vector<1x64xbf16>
      tpu.vector_store %arg6[%c17, %c0_31], %39 {strides = array<i32>} : memref<18x64xbf16, #tpu.memory_space<vmem>>, vector<1x64xbf16>,
    } else {
    }
    %c0_i32_7 = arith.constant 0 : i32
    %16 = arith.cmpi slt, %arg1, %c0_i32_7 : i32
    %17 = arith.extui %16 : i1 to i32
    %c0_i32_8 = arith.constant 0 : i32
    %18 = arith.cmpi ne, %17, %c0_i32_8 : i32
    scf.if %18 {
      %c16_i32_30 = arith.constant 16 : i32
      %39 = arith.addi %1, %c16_i32_30 : i32
      %c0_31 = arith.constant 0 : index
      %40 = arith.index_cast %39 : i32 to index
      %c0_32 = arith.constant 0 : index
      %41 = vector.load %arg2[%c0_31, %40, %c0_32] : memref<1x16x64xf32, #tpu.memory_space<vmem>>, vector<1x1x64xf32>
      %42 = vector.shape_cast %41 : vector<1x1x64xf32> to vector<1x64xf32>
      %43 = arith.truncf %42 : vector<1x64xf32> to vector<1x64xbf16>
      %c17 = arith.constant 17 : index
      %c0_33 = arith.constant 0 : index
      %44 = vector.load %arg6[%c17, %c0_33] : memref<18x64xbf16, #tpu.memory_space<vmem>>, vector<1x64xbf16>
      tpu.vector_store %arg6[%c17, %c0_33], %43 {strides = array<i32>} : memref<18x64xbf16, #tpu.memory_space<vmem>>, vector<1x64xbf16>,
    } else {
    }
    %c0_9 = arith.constant 0 : index
    %c0_10 = arith.constant 0 : index
    %19 = vector.load %arg6[%c0_9, %c0_10] : memref<18x64xbf16, #tpu.memory_space<vmem>>, vector<16x64xbf16>
    %c1_11 = arith.constant 1 : index
    %c0_12 = arith.constant 0 : index
    %20 = vector.load %arg6[%c1_11, %c0_12] : memref<18x64xbf16, #tpu.memory_space<vmem>>, vector<16x64xbf16>
    %c2 = arith.constant 2 : index
    %c0_13 = arith.constant 0 : index
    %21 = vector.load %arg6[%c2, %c0_13] : memref<18x64xbf16, #tpu.memory_space<vmem>>, vector<16x64xbf16>
    %c0_14 = arith.constant 0 : index
    %c0_15 = arith.constant 0 : index
    %c0_16 = arith.constant 0 : index
    %22 = vector.load %arg3[%c0_14, %c0_15, %c0_16] : memref<3x64x256xbf16, #tpu.memory_space<vmem>>, vector<1x64x256xbf16>
    %23 = vector.shape_cast %22 : vector<1x64x256xbf16> to vector<64x256xbf16>
    %cst = arith.constant dense<0.000000e+00> : vector<16x256xf32>
    %24 = tpu.matmul %19, %23, %cst {dimension_numbers = #tpu.dot_dimension_numbers<[1], [0], [0], [1], [0, 0, 1, 1], [], []>} : vector<16x64xbf16>, vector<64x256xbf16>, vector<16x256xf32> -> vector<16x256xf32>
    %c1_17 = arith.constant 1 : index
    %c0_18 = arith.constant 0 : index
    %c0_19 = arith.constant 0 : index
    %25 = vector.load %arg3[%c1_17, %c0_18, %c0_19] : memref<3x64x256xbf16, #tpu.memory_space<vmem>>, vector<1x64x256xbf16>
    %26 = vector.shape_cast %25 : vector<1x64x256xbf16> to vector<64x256xbf16>
    %cst_20 = arith.constant dense<0.000000e+00> : vector<16x256xf32>
    %27 = tpu.matmul %20, %26, %cst_20 {dimension_numbers = #tpu.dot_dimension_numbers<[1], [0], [0], [1], [0, 0, 1, 1], [], []>} : vector<16x64xbf16>, vector<64x256xbf16>, vector<16x256xf32> -> vector<16x256xf32>
    %28 = arith.addf %24, %27 : vector<16x256xf32>
    %c2_21 = arith.constant 2 : index
    %c0_22 = arith.constant 0 : index
    %c0_23 = arith.constant 0 : index
    %29 = vector.load %arg3[%c2_21, %c0_22, %c0_23] : memref<3x64x256xbf16, #tpu.memory_space<vmem>>, vector<1x64x256xbf16>
    %30 = vector.shape_cast %29 : vector<1x64x256xbf16> to vector<64x256xbf16>
    %cst_24 = arith.constant dense<0.000000e+00> : vector<16x256xf32>
    %31 = tpu.matmul %21, %30, %cst_24 {dimension_numbers = #tpu.dot_dimension_numbers<[1], [0], [0], [1], [0, 0, 1, 1], [], []>} : vector<16x64xbf16>, vector<64x256xbf16>, vector<16x256xf32> -> vector<16x256xf32>
    %32 = arith.addf %28, %31 : vector<16x256xf32>
    %c0_25 = arith.constant 0 : index
    %c0_26 = arith.constant 0 : index
    %33 = vector.load %arg4[%c0_25, %c0_26] : memref<1x256xf32, #tpu.memory_space<vmem>>, vector<1x256xf32>
    %34 = vector.broadcast %33 : vector<1x256xf32> to vector<16x256xf32>
    %35 = arith.addf %32, %34 : vector<16x256xf32>
    %c0_27 = arith.constant 0 : index
    %c0_28 = arith.constant 0 : index
    %c0_29 = arith.constant 0 : index
    %36 = vector.load %arg5[%c0_27, %c0_28, %c0_29] : memref<1x16x256xf32, #tpu.memory_space<vmem>>, vector<1x16x256xf32>
    %37 = vector.shape_cast %36 : vector<1x16x256xf32> to vector<16x256xf32>
    %38 = vector.shape_cast %35 : vector<16x256xf32> to vector<1x16x256xf32>
    tpu.vector_store %arg5[%c0_27, %c0_28, %c0_29], %38 {strides = array<i32>} : memref<1x16x256xf32, #tpu.memory_space<vmem>>, vector<1x16x256xf32>,
    return
  }
  func.func @transform_0(%arg0: i32, %arg1: i32) -> (i32, i32, i32) {
    %c0_i32 = arith.constant 0 : i32
    %c0_i32_0 = arith.constant 0 : i32
    %c0_i32_1 = arith.constant 0 : i32
    return %arg0, %c0_i32, %c0_i32_0 : i32, i32, i32
  }
  func.func @transform_1(%arg0: i32, %arg1: i32) -> (i32, i32, i32) {
    %c0_i32 = arith.constant 0 : i32
    %c0_i32_0 = arith.constant 0 : i32
    %c0_i32_1 = arith.constant 0 : i32
    %c0_i32_2 = arith.constant 0 : i32
    return %c0_i32, %c0_i32_0, %c0_i32_1 : i32, i32, i32
  }
  func.func @transform_2(%arg0: i32, %arg1: i32) -> (i32, i32) {
    %c0_i32 = arith.constant 0 : i32
    %c0_i32_0 = arith.constant 0 : i32
    %c0_i32_1 = arith.constant 0 : i32
    return %c0_i32, %c0_i32_0 : i32, i32
  }
  func.func @transform_3(%arg0: i32, %arg1: i32) -> (i32, i32, i32) {
    %c0_i32 = arith.constant 0 : i32
    %c0_i32_0 = arith.constant 0 : i32
    return %arg0, %arg1, %c0_i32 : i32, i32, i32
  }
}

</mosaic_0001>

<bundles_post_ra>
// kernel: upsample_block_forward.1
= control target key start
LH: loop header
LB: loop body
LE: loop exit
PB: predicated region body
PF: predicated region fallthrough
CT: control target
= control target key end

     0   :  { %s894_s12 = smov 0   ;;  %s896_s13 = smov 0   ;;  %s1116_s0 = inlined_call_operand.vmem [shape: f32[2,16,64], index: 0, kind: input, shape index: {}]   ;;  %s1117_s1 = inlined_call_operand.vmem [shape: bf16[3,64,256], index: 1, kind: input, shape index: {}]   ;;  %s1118_s2 = inlined_call_operand.vmem [shape: f32[1,256], index: 2, kind: input, shape index: {}]   ;;  %s1119_s3 = inlined_call_operand.vmem [shape: f32[2,16,256], index: 3, kind: output, shape index: {}]  }
   0x1   :  { %s898_s14 = smov 0  }
   0x2 LB: > { %s25_s15 = sadd.s32 1, %s868_s13  ;;  %p666_p0 = scmp.ge.s32.totalorder %s872_s14, 1  ;;  %s872_s14 = sphi %s898_s14, %s13_s14   ;;  %s868_s13 = sphi %s896_s13, %s1127_s13   ;;  %s864_s12 = sphi %s894_s12, %s1126_s12  }
   0x3   : > { %p27_p1 = scmp.ge.s32.totalorder %s25_s15, 2  ;;  %p151_p2 = scmp.lt.s32.totalorder %s872_s14, 3 }
   0x5   : > { %s1129_s15 = smov (%p27_p1, %s25_s15), 0  ;;  %p152_p3 = pnand %p666_p0, %p151_p2 }
   0x6   : > { %p180_p4 = scmp.lt.s32.totalorder (!%p152_p3), %s864_s12, 1 }
   0x7   : > { %155 = sbr.rel (%p152_p3) target bundleno = 218 (0xda), region = 32 }
   0xc   : > { %v741_v0 = vld [vmem:[%s1117_s1 + $0x30] sm:$0xf]  ;;  %v802_v1 = vld [vmem:[%s1117_s1 + $0x34] sm:$0xf0]  ;;  %v801_v2 = vld [vmem:[%s1117_s1 + $0x34] sm:$0xf] }
   0xd   : > { %v742_v3 = vor.u32 %v802_v1, %v741_v0  ;;  %v743_v4 = vld [vmem:[%s1117_s1 + $0x38] sm:$0xf0]  ;;  %v733_v5 = vld [vmem:[%s1117_s1 + $0x20] sm:$0xf]  ;;  %v800_v6 = vld [vmem:[%s1117_s1 + $0x24] sm:$0xf0] }
   0xe   : > { %v746_v7 = vor.u32 %v801_v2, %v743_v4  ;;  %v799_v8 = vld [vmem:[%s1117_s1 + $0x24] sm:$0xf]  ;;  %v735_v9 = vld [vmem:[%s1117_s1 + $0x28] sm:$0xf0]  ;;  %v707_v10 = vld [vmem:[%s1117_s1 + $0x70] sm:$0xf]  ;;  %v734_v11 = vor.u32 %v800_v6, %v733_v5 }
   0xf   : > { %440 = vmatpush.bf16.msra.mxu2 %v742_v3  ;;  %v810_v12 = vld [vmem:[%s1117_s1 + $0x74] sm:$0xf0]  ;;  %v809_v13 = vld [vmem:[%s1117_s1 + $0x74] sm:$0xf]  ;;  %v709_v14 = vld [vmem:[%s1117_s1 + $0x78] sm:$0xf0]  ;;  %v738_v15 = vor.u32 %v799_v8, %v735_v9 }
  0x10   : > { %454 = vmatpush.bf16.msra.mxu3 %v746_v7  ;;  %v708_v16 = vor.u32 %v810_v12, %v707_v10  ;;  %v712_v17 = vor.u32 %v809_v13, %v709_v14  ;;  %v725_v18 = vld [vmem:[%s1117_s1 + $0x10] sm:$0xf]  ;;  %v798_v19 = vld [vmem:[%s1117_s1 + $0x14] sm:$0xf0]  ;;  %v797_v20 = vld [vmem:[%s1117_s1 + $0x14] sm:$0xf] }
  0x11   : > { %v727_v21 = vld [vmem:[%s1117_s1 + $0x18] sm:$0xf0]  ;;  %v699_v22 = vld [vmem:[%s1117_s1 + $0x60] sm:$0xf]  ;;  %v808_v23 = vld [vmem:[%s1117_s1 + $0x64] sm:$0xf0]  ;;  %v726_v27 = vor.u32 %v798_v19, %v725_v18 }
  0x12   : > { %370 = vmatpush.bf16.msra.mxu0 %v708_v16  ;;  %384 = vmatpush.bf16.msra.mxu1 %v712_v17  ;;  %v700_v24 = vor.u32 %v808_v23, %v699_v22  ;;  %v807_v25 = vld [vmem:[%s1117_s1 + $0x64] sm:$0xf]  ;;  %v701_v26 = vld [vmem:[%s1117_s1 + $0x68] sm:$0xf0]  ;;  %v717_v29 = vld [vmem:[%s1117_s1] sm:$0xf]  ;;  %v730_v32 = vor.u32 %v797_v20, %v727_v21 }
  0x13   : > { %441 = vmatpush.bf16.msra.mxu2 %v734_v11  ;;  %v704_v28 = vor.u32 %v807_v25, %v701_v26  ;;  %v796_v30 = vld [vmem:[%s1117_s1 + $0x4] sm:$0xf0]  ;;  %v795_v31 = vld [vmem:[%s1117_s1 + $0x4] sm:$0xf]  ;;  %v691_v33 = vld [vmem:[%s1117_s1 + $0x50] sm:$0xf] }
  0x14   : > { %455 = vmatpush.bf16.msra.mxu3 %v738_v15  ;;  %v806_v34 = vld [vmem:[%s1117_s1 + $0x54] sm:$0xf0]  ;;  %v805_v35 = vld [vmem:[%s1117_s1 + $0x54] sm:$0xf]  ;;  %v719_v36 = vld [vmem:[%s1117_s1 + $0x8] sm:$0xf0]  ;;  %v718_v40 = vor.u32 %v796_v30, %v717_v29 }
  0x15   : > { %v693_v37 = vld [vmem:[%s1117_s1 + $0x58] sm:$0xf0]  ;;  %v692_v38 = vor.u32 %v806_v34, %v691_v33  ;;  %s1131_s12 = smov (!%p180_p4, %s864_s12), 1  ;;  %v722_v41 = vor.u32 %v795_v31, %v719_v36  ;;  %v683_v42 = vld [vmem:[%s1117_s1 + $0x40] sm:$0xf]  ;;  %vm226_vm1 = vcmask 519168  }
  0x16   : > { %371 = vmatpush.bf16.msra.mxu0 %v700_v24  ;;  %385 = vmatpush.bf16.msra.mxu1 %v704_v28  ;;  %v696_v39 = vor.u32 %v805_v35, %v693_v37  ;;  %v804_v43 = vld [vmem:[%s1117_s1 + $0x44] sm:$0xf0]  ;;  %s793_s30 = sshll.u32 %s1131_s12, 4  ;;  %v803_v44 = vld [vmem:[%s1117_s1 + $0x44] sm:$0xf]  ;;  %vm234_vm5 = vcmask 516096  }
  0x17   : > { %442 = vmatpush.bf16.msra.mxu2 %v726_v27  ;;  %v685_v45 = vld [vmem:[%s1117_s1 + $0x48] sm:$0xf0]  ;;  %s184_s10 = scalar_lea.vmem %s1116_s0, %s793_s30  ;;  %vm204_vm0 = vsmask.f32 4368  ;;  %v684_v46 = vor.u32 %v804_v43, %v683_v42  ;;  %vm227_vm2 = vsmask.f32 7938 }
  0x18   : > { %456 = vmatpush.bf16.msra.mxu3 %v730_v32  ;;  %v688_v47 = vor.u32 %v803_v44, %v685_v45  ;;  %v199_v48 = vld [vmem:[%s184_s10] sm:$0xff]  ;;  %v200_v49 = vld [vmem:[%s184_s10 + $0x8] sm:$0xff]  ;;  %vm203_vm3 = vsmask.f32 256  ;;  %vm1025_vm6 = vmand %vm226_vm1, %vm227_vm2  ;;  %vm362_vm9 = vcmask 523264   ;;  %vm476_vm11 = vcmask 1046528  }
  0x19   : > { %v201_v50 = vpack.c.bf16 %v199_v48, %v199_v48  ;;  %v202_v51 = vpack.c.bf16 %v200_v49, %v200_v49  ;;  %vm1019_vm4 = vmor %vm203_vm3, %vm204_vm0  ;;  %v229_v58 = vld [vmem:[#allocation2] sm:$0xf]  ;;  %v783_v59 = vld [vmem:[%s1117_s1 + $0xb0] sm:$0xf]  ;;  %vm309_vm10 = vsmask.f32 7424 }
  0x1a   : > { %372 = vmatpush.bf16.msra.mxu0 %v692_v38  ;;  %386 = vmatpush.bf16.msra.mxu1 %v696_v39  ;;  %v818_v60 = vld [vmem:[%s1117_s1 + $0xb4] sm:$0xf0]  ;;  %v817_v61 = vld [vmem:[%s1117_s1 + $0xb4] sm:$0xf]  ;;  %vm1040_vm7 = vmand %vm234_vm5, %vm203_vm3  ;;  %s794_s26 = sshll.u32 %s1131_s12, 5 }
  0x1b   : > { %443 = vmatpush.bf16.msra.mxu2 %v718_v40  ;;  %v207_v53 = vshrl.u32 %v201_v50, 16  ;;  %v210_v54 = vshll.u32 %v201_v50, 16  ;;  %v215_v55 = vshrl.u32 %v202_v51, 16  ;;  %v218_v56 = vshll.u32 %v202_v51, 16  ;;  %v236_v1 = vld [vmem:[#allocation2 + $0x8] sm:$0x1]  ;;  %vm260_vm8 = vmand %vm234_vm5, %vm227_vm2  ;;  %s194_s29 = scalar_lea.vmem %s1119_s3, %s794_s26 }
  0x1c   : > { %457 = vmatpush.bf16.msra.mxu3 %v722_v41  ;;  %v784_v2 = vor.u32 %v818_v60, %v783_v59  ;;  %v785_v3 = vld [vmem:[%s1117_s1 + $0xb8] sm:$0xf0]  ;;  %v775_v5 = vld [vmem:[%s1117_s1 + $0xa0] sm:$0xf]  ;;  %v816_v6 = vld [vmem:[%s1117_s1 + $0xa4] sm:$0xf0] }
  0x1d   : > { %v209_v62 = vrot.slane %v207_v53, 7  ;;  %v217_v63 = vrot.slane %v215_v55, 7  ;;  %v788_v4 = vor.u32 %v817_v61, %v785_v3  ;;  %v815_v7 = vld [vmem:[%s1117_s1 + $0xa4] sm:$0xf]  ;;  %v777_v12 = vld [vmem:[%s1117_s1 + $0xa8] sm:$0xf0]  ;;  %v776_v13 = vor.u32 %v816_v6, %v775_v5 }
  0x1e   : > { %373 = vmatpush.bf16.msra.mxu0 %v684_v46  ;;  %387 = vmatpush.bf16.msra.mxu1 %v688_v47  ;;  %v780_v14 = vor.u32 %v815_v7, %v777_v12  ;;  %v767_v15 = vld [vmem:[%s1117_s1 + $0x90] sm:$0xf]  ;;  %v814_v16 = vld [vmem:[%s1117_s1 + $0x94] sm:$0xf0]  ;;  %v813_v20 = vld [vmem:[%s1117_s1 + $0x94] sm:$0xf] }
  0x1f   : > { %v212_v8 = vor.u32 %v210_v54, %v209_v62  ;;  %v213_v9 = vrot.slane %v209_v62, 4  ;;  %v220_v10 = vor.u32 %v218_v56, %v217_v63  ;;  %v222_v11 = vrot.slane %v217_v63, 4  ;;  %v769_v21 = vld [vmem:[%s1117_s1 + $0x98] sm:$0xf0]  ;;  %v759_v24 = vld [vmem:[%s1117_s1 + $0x80] sm:$0xf] }
  0x20   : > { %v768_v22 = vor.u32 %v814_v16, %v767_v15  ;;  %v772_v23 = vor.u32 %v813_v20, %v769_v21  ;;  %v812_v25 = vld [vmem:[%s1117_s1 + $0x84] sm:$0xf0]  ;;  %v811_v26 = vld [vmem:[%s1117_s1 + $0x84] sm:$0xf]  ;;  %v761_v27 = vld [vmem:[%s1117_s1 + $0x88] sm:$0xf0] }
  0x21   : > { %v221_v17 = vsel %vm1019_vm4, %v213_v9, %v220_v10  ;;  %v230_v18 = vsel %vm1025_vm6, %v212_v8, %v229_v58  ;;  %v237_v19 = vsel %vm1040_vm7, %v222_v11, %v236_v1  ;;  %v760_v28 = vor.u32 %v812_v25, %v759_v24  ;;  %v555_v57 = vld [vmem:[%s1118_s2] sm:$0x3] }
  0x22   : > { %527 = vmatpush.bf16.msrb.mxu0 %v784_v2  ;;  %541 = vmatpush.bf16.msrb.mxu1 %v788_v4  ;;  %231 = vst [vmem:[#allocation2] sm:$0xf] %v230_v18  ;;  %v764_v29 = vor.u32 %v811_v26, %v761_v27  ;;  %v557_v60 = vperm.slane %v555_v57, 0  ;;  %v558_v61 = vperm.slane %v555_v57, 1 }
  0x23   : > { %233 = vst.msk [vmem:[#allocation2 + $0x4] sm:$0xf] %vm226_vm1, %v221_v17 }
  0x24   : > { %238 = vst [vmem:[#allocation2 + $0x8] sm:$0x1] %v237_v19 }
  0x26   : > { %528 = vmatpush.bf16.msrb.mxu0 %v776_v13  ;;  %542 = vmatpush.bf16.msrb.mxu1 %v780_v14 }
  0x29   : > { %v243_v30 = vld [vmem:[#allocation2] sm:$0x1]  ;;  %v824_v46 = vld [vmem:[#allocation2] sm:$0xe] }
  0x2a   : > { %529 = vmatpush.bf16.msrb.mxu0 %v768_v22  ;;  %543 = vmatpush.bf16.msrb.mxu1 %v772_v23  ;;  %v244_v31 = vsel %vm1040_vm7, 0, %v243_v30  ;;  %v823_v45 = vld [vmem:[#allocation2] sm:$0xf0] }
  0x2b   : > { %245 = vst [vmem:[#allocation2] sm:$0x1] %v244_v31  ;;  %v261_v32 = vld [vmem:[#allocation2 + $0x8] sm:$0x1]  ;;  %v825_v47 = vor.u32 %v824_v46, %v823_v45 }
  0x2c   : > { %v262_v33 = vsel %vm260_vm8, 0, %v261_v32 }
  0x2d   : > { %263 = vst [vmem:[#allocation2 + $0x8] sm:$0x1] %v262_v33  ;;  %v477_v48 = vrot.slane %v825_v47, 1 }
  0x2e   : > { %530 = vmatpush.bf16.msrb.mxu0 %v760_v28  ;;  %544 = vmatpush.bf16.msrb.mxu1 %v764_v29 }
  0x32   : > { %v820_v34 = vld [vmem:[#allocation2] sm:$0xff]  }
  0x33   : > { %v313_v35 = vshll.u32 %v820_v34, 16  ;;  %747 = vmatmul.msk.bf16.vlgmr.msra.gmra.mxu2 %vm362_vm9, %v820_v34  ;;  %748 = vmatmul.msk.bf16.vlgmr.msra.gmra.mxu3 %vm362_vm9, %v820_v34  ;;  %v311_v37 = vshrl.u32 %v820_v34, 16 }
  0x34   : > { %v282_v36 = vld [vmem:[#allocation2 + $0x8] sm:$0x1] }
  0x35   : > { %v315_v38 = vrot.slane %v313_v35, 1  ;;  %v306_v39 = vunpack.c.l.b16 %v282_v36 }
  0x37   : > { %v308_v40 = vpack.c.b16 %v306_v39, %v306_v39  ;;  %v316_v41 = vor.u32 %v315_v38, %v311_v37 }
  0x39   : > { %v318_v42 = vshll.u32 %v308_v40, 16  ;;  %v478_v49 = vrot.slane %v308_v40, 1 }
  0x3b   : > { %v320_v43 = vrot.slane %v318_v42, 1  ;;  %v479_v50 = vsel %vm476_vm11, %v477_v48, %v478_v49 }
  0x3d   : > { %v321_v44 = vsel %vm309_vm10, %v316_v41, %v320_v43 }
  0x3e   : > { %713 = vmatmul.msk.bf16.vlgmr.msra.gmra.mxu0 %vm362_vm9, %v321_v44  ;;  %714 = vmatmul.msk.bf16.vlgmr.msra.gmra.mxu1 %vm362_vm9, %v321_v44 }
  0x4e   : > { %789 = vmatmul.msk.bf16.vlgmr.msrb.gmra.mxu0 %vm362_vm9, %v479_v50  ;;  %790 = vmatmul.msk.bf16.vlgmr.msrb.gmra.mxu1 %vm362_vm9, %v479_v50 }
  0xb6   : > { %v445_v55 = vpop.f32.mrf.mxu2  ;;  %v459_v56 = vpop.f32.mrf.mxu3 }
  0xbb   : > { %v375_v51 = vpop.f32.mrf.mxu0  ;;  %v389_v52 = vpop.f32.mrf.mxu1 }
  0xbc   : > { %v446_v58 = vadd.f32 %v445_v55, %v375_v51  ;;  %v460_v59 = vadd.f32 %v459_v56, %v389_v52 }
  0xbe   : > { %v447_v4 = vpop.f32.mrf.mxu2  ;;  %v461_v5 = vpop.f32.mrf.mxu3 }
  0xc3   : > { %v377_v53 = vpop.f32.mrf.mxu0  ;;  %v391_v54 = vpop.f32.mrf.mxu1 }
  0xc4   : > { %v448_v6 = vadd.f32 %v447_v4, %v377_v53  ;;  %v462_v7 = vadd.f32 %v461_v5, %v391_v54 }
  0xcb   : > { %v532_v62 = vpop.f32.mrf.mxu0  ;;  %v546_v63 = vpop.f32.mrf.mxu1 }
  0xcc   : > { %v551_v0 = vadd.f32 %v532_v62, %v446_v58  ;;  %v552_v1 = vadd.f32 %v546_v63, %v460_v59 }
  0xce   : > { %v561_v2 = vadd.f32 %v557_v60, %v551_v0  ;;  %v562_v3 = vadd.f32 %v558_v61, %v552_v1 }
  0xd0   : > { %565 = vst [vmem:[%s194_s29] sm:$0xff] %v561_v2 }
  0xd1   : > { %566 = vst [vmem:[%s194_s29 + $0x8] sm:$0xff] %v562_v3 }
  0xd3   : > { %v534_v8 = vpop.f32.mrf.mxu0  ;;  %v548_v9 = vpop.f32.mrf.mxu1 }
  0xd4   : > { %v553_v10 = vadd.f32 %v534_v8, %v448_v6  ;;  %v554_v11 = vadd.f32 %v548_v9, %v462_v7 }
  0xd6   : > { %v563_v12 = vadd.f32 %v557_v60, %v553_v10  ;;  %v564_v13 = vadd.f32 %v558_v61, %v554_v11 }
  0xd8   : > { %567 = vst [vmem:[%s194_s29 + $0x10] sm:$0xff] %v563_v12 }
  0xd9   : > { %568 = vst [vmem:[%s194_s29 + $0x18] sm:$0xff] %v564_v13 }
  0xda PF: > { %s13_s14 = sadd.s32 1, %s872_s14   ;;  %s1126_s12 = smov %s868_s13 }
  0xdb   : > { %p10_p5 = scmp.ge.s32.totalorder %s13_s14, 4   ;;  %s1127_s13 = smov %s1129_s15 }
  0xdd   :  { %12 = sbr.rel (!%p10_p5) target bundleno = 2 (0x2), region = 83 }

</bundles_post_ra>
